<compile_context>
chip_gen: v6e
topology: v6e:2x2x1
jax: 0.10.0
libtpu: 0.0.40
codegen_flags: <defaults>
</compile_context>

<pallas_src>
import jax
import jax.numpy as jnp
from jax.experimental import pallas as pl
from jax.experimental.pallas import tpu as pltpu

_LANE = 128
_BTILE = 16  # batch-tile granularity (covers f32 (8,*) and bf16 (16,*) tiling)


def _round_up(x, m):
    return ((x + m - 1) // m) * m


def _cdiv(a, b):
    return -(-a // b)


def _vmem_capacity_bytes():
    """Per-generation VMEM capacity (128 MiB v5e/v6e, 64 MiB v7x)."""
    try:
        info = pltpu.get_tpu_info()
        cap = getattr(info, "vmem_capacity_bytes", None)
        if cap:
            return int(cap)
    except Exception:
        pass
    return 64 << 20  # conservative fallback (v7x)


def _make_kernel(num_hidden, activation, normalize_input, output_dim):
    """Builds the Pallas kernel for the full MLP chain.

    Kernel ref order:
      x_ref, [min_ref, inv_range_ref,] w_in_ref,
      (w_h0, b_h0, w_h1, b_h1, ...), w_out_ref, b_out_ref, o_ref
    """

    def act(x):
        if activation == "tanh":
            # NOTE: on v6e/v7x a bf16 tanh (EUP bf16) would roughly double
            # transcendental throughput; kept in f32 here to match the f32
            # reference numerics (and v5e lacks bf16 EUP).
            return jnp.tanh(x)
        elif activation == "relu":
            return jnp.maximum(x, 0.0)
        else:
            raise NotImplementedError(activation)

    def kernel(*refs):
        idx = 0
        x_ref = refs[idx]; idx += 1
        if normalize_input:
            min_ref = refs[idx]; idx += 1
            inv_ref = refs[idx]; idx += 1
        w_in_ref = refs[idx]; idx += 1
        hidden_refs = refs[idx: idx + 2 * num_hidden]; idx += 2 * num_hidden
        w_out_ref = refs[idx]; idx += 1
        b_out_ref = refs[idx]; idx += 1
        o_ref = refs[idx]

        if normalize_input:
            # Global (whole-batch) per-feature min / inv_range are precomputed
            # in the wrapper, so semantics are preserved under batch tiling.
            # Multiply by the precomputed reciprocal instead of dividing.
            x = (x_ref[...].astype(jnp.float32) - min_ref[...]) * inv_ref[...]
            x = x.astype(jnp.bfloat16)
        else:
            x = x_ref[...]  # already streamed as bf16

        # Input layer (no bias) + activation. bf16 MXU inputs, f32 accumulate.
        # K = native input_dim (MXU is nowhere near the bottleneck here).
        h = jnp.dot(x, w_in_ref[...], preferred_element_type=jnp.float32)
        h = act(h)

        # Hidden layers (with bias) + activation, lane-dense (128-padded).
        for li in range(num_hidden):
            w_ref = hidden_refs[2 * li]
            b_ref = hidden_refs[2 * li + 1]
            h = jnp.dot(h.astype(jnp.bfloat16), w_ref[...],
                        preferred_element_type=jnp.float32)
            h = act(h + b_ref[...])  # bias add + activation in f32

        # Output layer: lane-dense matmul, then slice back to the native
        # output width (static slice inside the first (8,128) tile -> masked
        # store, HBM writeback only output_dim columns).
        y = jnp.dot(h.astype(jnp.bfloat16), w_out_ref[...],
                    preferred_element_type=jnp.float32)
        o_ref[...] = (y[:, :output_dim] + b_out_ref[...]).astype(o_ref.dtype)

    return kernel


def full_conn_base_net_forward(
    x, params, *, activation="tanh", normalize_input=False, tile_n=1024
):
    """Runs the FullConnBaseNet forward pass as a batch-tiled Pallas kernel.

    Args:
      x: (N, input_dim) float32 array.
      params: dict with keys
        'w_in'  : (input_dim, layer_size[0])      -- input layer, no bias
        'w_hid' : list of (in, out) hidden weights
        'b_hid' : list of (1, out) hidden biases
        'w_out' : (layer_size[-1], output_dim)
        'b_out' : (1, output_dim)
    Returns:
      (N, output_dim) float32 array.
    """
    num_hidden = len(params["w_hid"])
    n, input_dim = x.shape
    output_dim = params["w_out"].shape[1]

    # Lane-aligned hidden/matmul dims (zero padding is exact). Note: if real
    # layer_size is >= 256, rounding to 256 keeps v6e/v7x MXU passes full.
    hid_dims = [params["w_in"].shape[1]] + [w.shape[1] for w in params["w_hid"]]
    hid_pad = [_round_up(d, _LANE) for d in hid_dims]
    out_pad = _round_up(output_dim, _LANE)

    # Batch tile: size it so the last grid step isn't mostly padding, and
    # force grid >= 2 when the batch allows so ("parallel",) can shard the
    # batch across both TensorCores on v7x.
    num_tiles = max(1, _cdiv(n, tile_n))
    if num_tiles == 1 and n > _BTILE:
        num_tiles = 2
    tile = _round_up(_cdiv(n, num_tiles), _BTILE)
    n_padded = _round_up(n, tile)
    grid = (n_padded // tile,)

    def pad2(a, rows, cols):
        return jnp.pad(a, ((0, rows - a.shape[0]), (0, cols - a.shape[1])))

    # Weights in bf16 (halves resident bytes, feeds the bf16 MXU); biases stay
    # f32 since the bias add happens in f32.
    w_in = params["w_in"]
    w_in = pad2(w_in, input_dim, hid_pad[0]).astype(jnp.bfloat16)
    w_hid, b_hid = [], []
    for li, (w, b) in enumerate(zip(params["w_hid"], params["b_hid"])):
        w_hid.append(pad2(w, hid_pad[li], hid_pad[li + 1]).astype(jnp.bfloat16))
        b_hid.append(pad2(b, 1, hid_pad[li + 1]).astype(jnp.float32))
    w_out = pad2(params["w_out"], hid_pad[-1], out_pad).astype(jnp.bfloat16)
    b_out = params["b_out"].astype(jnp.float32)  # (1, output_dim), unpadded

    # Streamed x at NATIVE feature width. bf16 when no in-kernel normalization
    # (bit-identical: first matmul casts to bf16 anyway), f32 otherwise.
    x_dtype = jnp.float32 if normalize_input else jnp.bfloat16
    x_p = jnp.pad(x.astype(x_dtype), ((0, n_padded - n), (0, 0)))

    kernel = _make_kernel(num_hidden, activation, normalize_input, output_dim)

    def resident_spec(shape):
        nd = len(shape)
        # NOTE: for wide real nets on v7x, pipeline_mode=pl.Buffered(1) here
        # would single-buffer these never-changing blocks and halve their
        # VMEM footprint.
        return pl.BlockSpec(shape, lambda i, _nd=nd: (0,) * _nd)

    flat_inputs = [x_p]
    in_specs = [pl.BlockSpec((tile, input_dim), lambda i: (i, 0))]

    if normalize_input:
        # Global min / inv_range over the *unpadded* batch, computed once.
        xf = x.astype(jnp.float32)
        mn = jnp.min(xf, axis=0, keepdims=True)
        mx = jnp.max(xf, axis=0, keepdims=True)
        inv = 1.0 / (mx - mn + 1e-7)
        flat_inputs += [mn, inv]
        in_specs += [resident_spec((1, input_dim)),
                     resident_spec((1, input_dim))]

    flat_inputs.append(w_in)
    in_specs.append(resident_spec(w_in.shape))
    for w, b in zip(w_hid, b_hid):
        flat_inputs.append(w)
        in_specs.append(resident_spec(w.shape))
        flat_inputs.append(b)
        in_specs.append(resident_spec(b.shape))
    flat_inputs.append(w_out)
    in_specs.append(resident_spec(w_out.shape))
    flat_inputs.append(b_out)
    in_specs.append(resident_spec(b_out.shape))

    out_specs = pl.BlockSpec((tile, output_dim), lambda i: (i, 0))

    # VMEM budget: residents (double-buffered by default), double-buffered
    # streamed x/out tiles, live f32 intermediates, headroom. Clamped against
    # the queried per-generation capacity (128 MiB v5e/v6e, 64 MiB v7x).
    itemsize = lambda a: jnp.dtype(a.dtype).itemsize
    resident_bytes = sum(int(a.size) * itemsize(a) for a in flat_inputs[1:])
    streamed_bytes = 2 * tile * (input_dim * itemsize(x_p) + output_dim * 4)
    act_bytes = 4 * tile * max(hid_pad + [out_pad]) * 4
    est = 2 * resident_bytes + streamed_bytes + act_bytes + (4 << 20)
    cap = _vmem_capacity_bytes()
    vmem_limit = int(min(max(est, 32 << 20), cap - (8 << 20)))

    out = pl.pallas_call(
        kernel,
        out_shape=jax.ShapeDtypeStruct((n_padded, output_dim), jnp.float32),
        grid=grid,
        in_specs=in_specs,
        out_specs=out_specs,
        compiler_params=pltpu.CompilerParams(
            dimension_semantics=("parallel",),
            vmem_limit_bytes=vmem_limit,
        ),
    )(*flat_inputs)

    return out[:n, :]


def init_params(key, input_dim, layer_size, output_dim):
    """Deterministic parameter init (weights pre-transposed to (in, out))."""
    keys = jax.random.split(key, 2 + 2 * len(layer_size))
    kidx = 0

    def nxt():
        nonlocal kidx
        k = keys[kidx]
        kidx += 1
        return k

    def uniform(k, shape, fan_in):
        bound = 1.0 / jnp.sqrt(jnp.float32(fan_in))
        return jax.random.uniform(
            k, shape, dtype=jnp.float32, minval=-bound, maxval=bound
        )

    params = {}
    # Input layer: Linear(input_dim, layer_size[0], bias=False)
    params["w_in"] = uniform(nxt(), (input_dim, layer_size[0]), input_dim)

    # Hidden layers: Linear(in, out) with bias
    w_hid, b_hid = [], []
    for fin, fout in zip(layer_size[:-1], layer_size[1:]):
        w_hid.append(uniform(nxt(), (fin, fout), fin))
        b_hid.append(uniform(nxt(), (1, fout), fin))
    params["w_hid"] = w_hid
    params["b_hid"] = b_hid

    # Output layer: Linear(layer_size[-1], output_dim) with bias
    params["w_out"] = uniform(nxt(), (layer_size[-1], output_dim), layer_size[-1])
    params["b_out"] = uniform(nxt(), (1, output_dim), layer_size[-1])
    return params


def reference_forward(x, params, *, activation="tanh", normalize_input=False):
    """Plain-JAX reference matching the kernel's numerics (bf16 MXU inputs,
    f32 accumulation, f32 bias/activation, multiply-by-reciprocal normalize)."""
    act = jnp.tanh if activation == "tanh" else (lambda v: jnp.maximum(v, 0.0))

    def mm(a, w):
        return jnp.dot(a.astype(jnp.bfloat16), w.astype(jnp.bfloat16),
                       preferred_element_type=jnp.float32)

    h = x.astype(jnp.float32)
    if normalize_input:
        mn = jnp.min(h, axis=0, keepdims=True)
        mx = jnp.max(h, axis=0, keepdims=True)
        h = (h - mn) * (1.0 / (mx - mn + 1e-7))
    h = act(mm(h, params["w_in"]))
    for w, b in zip(params["w_hid"], params["b_hid"]):
        h = act(mm(h, w) + b)
    return mm(h, params["w_out"]) + params["b_out"]


if __name__ == "__main__":
    key = jax.random.PRNGKey(0)
    k_x, k_p, k_x2 = jax.random.split(key, 3)

    # Small shapes consistent with the module: N x input_dim inputs.
    N = 8
    input_dim = 4
    layer_size = [32, 32]
    output_dim = 3
    activation = "tanh"

    x = jax.random.normal(k_x, (N, input_dim), dtype=jnp.float32)
    params = init_params(k_p, input_dim, layer_size, output_dim)

    # bf16 MXU inputs + hardware transcendentals => compare at bf16-level tol.
    ATOL = RTOL = 5e-3

    # Check both normalize_input settings against the matched JAX reference.
    for norm in (False, True):
        y = full_conn_base_net_forward(
            x, params, activation=activation, normalize_input=norm
        )
        y = jax.block_until_ready(y)
        y_ref = reference_forward(
            x, params, activation=activation, normalize_input=norm
        )
        assert y.shape == (N, output_dim)
        assert jnp.allclose(y, y_ref, atol=ATOL, rtol=RTOL), (
            "max abs diff", float(jnp.max(jnp.abs(y - y_ref))), "norm", norm)

    # Larger batch with a small tile: exercises grid > 1 and batch padding.
    N2 = 300
    x2 = jax.random.normal(k_x2, (N2, input_dim), dtype=jnp.float32)
    y2 = full_conn_base_net_forward(
        x2, params, activation=activation, normalize_input=False, tile_n=128
    )
    y2 = jax.block_until_ready(y2)
    y2_ref = reference_forward(
        x2, params, activation=activation, normalize_input=False
    )
    assert y2.shape == (N2, output_dim)
    assert jnp.allclose(y2, y2_ref, atol=ATOL, rtol=RTOL), (
        "max abs diff", float(jnp.max(jnp.abs(y2 - y2_ref))))

    print("KERNEL_OK")
</pallas_src>

<mosaic_0001>
module attributes {stable_mosaic.version = 11 : i64} {
  func.func @kernel(%arg0: i32, %arg1: memref<16x4xbf16, #tpu.memory_space<vmem>>, %arg2: memref<4x128xbf16, #tpu.memory_space<vmem>>, %arg3: memref<128x128xbf16, #tpu.memory_space<vmem>>, %arg4: memref<1x128xf32, #tpu.memory_space<vmem>>, %arg5: memref<128x128xbf16, #tpu.memory_space<vmem>>, %arg6: memref<1x3xf32, #tpu.memory_space<vmem>>, %arg7: memref<16x3xf32, #tpu.memory_space<vmem>>) attributes {dimension_semantics = [#tpu.dimension_semantics<parallel>], iteration_bounds = array<i64: 1>, scalar_prefetch = 0 : i64, scratch_operands = 0 : i64, tpu.core_type = #tpu.core_type<tc>, window_params = [{transform_indices = @transform_0, window_bounds = array<i64: 16, 4>}, {pipeline_mode = #tpu.pipeline_mode<synchronous>, transform_indices = @transform_1, window_bounds = array<i64: 4, 128>}, {pipeline_mode = #tpu.pipeline_mode<synchronous>, transform_indices = @transform_2, window_bounds = array<i64: 128, 128>}, {pipeline_mode = #tpu.pipeline_mode<synchronous>, transform_indices = @transform_3, window_bounds = array<i64: 1, 128>}, {pipeline_mode = #tpu.pipeline_mode<synchronous>, transform_indices = @transform_4, window_bounds = array<i64: 128, 128>}, {pipeline_mode = #tpu.pipeline_mode<synchronous>, transform_indices = @transform_5, window_bounds = array<i64: 1, 3>}, {transform_indices = @transform_6, window_bounds = array<i64: 16, 3>}]} {
    %c0 = arith.constant 0 : index
    %c0_0 = arith.constant 0 : index
    %0 = vector.load %arg1[%c0, %c0_0] : memref<16x4xbf16, #tpu.memory_space<vmem>>, vector<16x4xbf16>
    %c0_1 = arith.constant 0 : index
    %c0_2 = arith.constant 0 : index
    %1 = vector.load %arg2[%c0_1, %c0_2] : memref<4x128xbf16, #tpu.memory_space<vmem>>, vector<4x128xbf16>
    %cst = arith.constant dense<0.000000e+00> : vector<16x128xf32>
    %2 = tpu.matmul %0, %1, %cst {dimension_numbers = #tpu.dot_dimension_numbers<[1], [0], [0], [1], [0, 0, 1, 1], [], []>} : vector<16x4xbf16>, vector<4x128xbf16>, vector<16x128xf32> -> vector<16x128xf32>
    %3 = math.tanh %2 : vector<16x128xf32>
    %4 = arith.truncf %3 : vector<16x128xf32> to vector<16x128xbf16>
    %c0_3 = arith.constant 0 : index
    %c0_4 = arith.constant 0 : index
    %5 = vector.load %arg3[%c0_3, %c0_4] : memref<128x128xbf16, #tpu.memory_space<vmem>>, vector<128x128xbf16>
    %cst_5 = arith.constant dense<0.000000e+00> : vector<16x128xf32>
    %6 = tpu.matmul %4, %5, %cst_5 {dimension_numbers = #tpu.dot_dimension_numbers<[1], [0], [0], [1], [0, 0, 1, 1], [], []>} : vector<16x128xbf16>, vector<128x128xbf16>, vector<16x128xf32> -> vector<16x128xf32>
    %c0_6 = arith.constant 0 : index
    %c0_7 = arith.constant 0 : index
    %7 = vector.load %arg4[%c0_6, %c0_7] : memref<1x128xf32, #tpu.memory_space<vmem>>, vector<1x128xf32>
    %8 = vector.broadcast %7 : vector<1x128xf32> to vector<16x128xf32>
    %9 = arith.addf %6, %8 : vector<16x128xf32>
    %10 = math.tanh %9 : vector<16x128xf32>
    %11 = arith.truncf %10 : vector<16x128xf32> to vector<16x128xbf16>
    %c0_8 = arith.constant 0 : index
    %c0_9 = arith.constant 0 : index
    %12 = vector.load %arg5[%c0_8, %c0_9] : memref<128x128xbf16, #tpu.memory_space<vmem>>, vector<128x128xbf16>
    %cst_10 = arith.constant dense<0.000000e+00> : vector<16x128xf32>
    %13 = tpu.matmul %11, %12, %cst_10 {dimension_numbers = #tpu.dot_dimension_numbers<[1], [0], [0], [1], [0, 0, 1, 1], [], []>} : vector<16x128xbf16>, vector<128x128xbf16>, vector<16x128xf32> -> vector<16x128xf32>
    %14 = vector.extract_strided_slice %13 {offsets = [0, 0], sizes = [16, 3], strides = [1, 1]} : vector<16x128xf32> to vector<16x3xf32>
    %c0_11 = arith.constant 0 : index
    %c0_12 = arith.constant 0 : index
    %15 = vector.load %arg6[%c0_11, %c0_12] : memref<1x3xf32, #tpu.memory_space<vmem>>, vector<1x3xf32>
    %16 = vector.broadcast %15 : vector<1x3xf32> to vector<16x3xf32>
    %17 = arith.addf %14, %16 : vector<16x3xf32>
    %c0_13 = arith.constant 0 : index
    %c0_14 = arith.constant 0 : index
    %18 = vector.load %arg7[%c0_13, %c0_14] : memref<16x3xf32, #tpu.memory_space<vmem>>, vector<16x3xf32>
    tpu.vector_store %arg7[%c0_13, %c0_14], %17 {strides = array<i32>} : memref<16x3xf32, #tpu.memory_space<vmem>>, vector<16x3xf32>,
    return
  }
  func.func @transform_0(%arg0: i32) -> (i32, i32) {
    %c0_i32 = arith.constant 0 : i32
    %c0_i32_0 = arith.constant 0 : i32
    return %arg0, %c0_i32 : i32, i32
  }
  func.func @transform_1(%arg0: i32) -> (i32, i32) {
    %c0_i32 = arith.constant 0 : i32
    %c0_i32_0 = arith.constant 0 : i32
    %c0_i32_1 = arith.constant 0 : i32
    return %c0_i32, %c0_i32_0 : i32, i32
  }
  func.func @transform_2(%arg0: i32) -> (i32, i32) {
    %c0_i32 = arith.constant 0 : i32
    %c0_i32_0 = arith.constant 0 : i32
    %c0_i32_1 = arith.constant 0 : i32
    return %c0_i32, %c0_i32_0 : i32, i32
  }
  func.func @transform_3(%arg0: i32) -> (i32, i32) {
    %c0_i32 = arith.constant 0 : i32
    %c0_i32_0 = arith.constant 0 : i32
    %c0_i32_1 = arith.constant 0 : i32
    return %c0_i32, %c0_i32_0 : i32, i32
  }
  func.func @transform_4(%arg0: i32) -> (i32, i32) {
    %c0_i32 = arith.constant 0 : i32
    %c0_i32_0 = arith.constant 0 : i32
    %c0_i32_1 = arith.constant 0 : i32
    return %c0_i32, %c0_i32_0 : i32, i32
  }
  func.func @transform_5(%arg0: i32) -> (i32, i32) {
    %c0_i32 = arith.constant 0 : i32
    %c0_i32_0 = arith.constant 0 : i32
    %c0_i32_1 = arith.constant 0 : i32
    return %c0_i32, %c0_i32_0 : i32, i32
  }
  func.func @transform_6(%arg0: i32) -> (i32, i32) {
    %c0_i32 = arith.constant 0 : i32
    %c0_i32_0 = arith.constant 0 : i32
    return %arg0, %c0_i32 : i32, i32
  }
}

</mosaic_0001>

<bundles_post_ra>
// kernel: tpu_custom_call.1
= control target key start
LH: loop header
LB: loop body
LE: loop exit
PB: predicated region body
PF: predicated region fallthrough
CT: control target
= control target key end

     0   :  { %11 = vsyncpa [#allocation3], 0  ;;  %s599_s0 = inlined_call_operand.vmem [shape: bf16[16,4], index: 0, kind: input, shape index: {}]   ;;  %s600_s1 = inlined_call_operand.vmem [shape: bf16[4,128], index: 1, kind: input, shape index: {}]   ;;  %s601_s2 = inlined_call_operand.hbm [shape: bf16[128,128], index: 2, kind: input, shape index: {}]   ;;  %s602_s3 = inlined_call_operand.vmem [shape: f32[1,128], index: 3, kind: input, shape index: {}]   ;;  %s603_s4 = inlined_call_operand.hbm [shape: bf16[128,128], index: 4, kind: input, shape index: {}]   ;;  %s604_s5 = inlined_call_operand.vmem [shape: f32[1,3], index: 5, kind: input, shape index: {}]   ;;  %s605_s6 = inlined_call_operand.vmem [shape: f32[16,3], index: 6, kind: output, shape index: {}]  }
   0x1   :  { %12 = vsyncpa [#allocation5], 0  ;;  %s511_s21 = smov [#allocation2]  }
   0x2   :  { %s22_s22 = sshll.u32 %s511_s21, 4  ;;  %s23_s22 = int_to_ptr.vmem [resolvable:$true] %s22_s22 }
   0x3   :  { %s475_s23 = scalar_lea.vmem %s23_s22, 1024  ;;  %p480_p1 = scmp.lt.s32.totalorder %s23_s22, %s23_s22 }
   0x4   :  { %p476_p0 = scmp.ne.s32.totalorder %s23_s22, %s475_s23  ;;  %p481_p2 = scmp.lt.s32.totalorder %s475_s23, %s475_s23 }
   0x6   :  { %p482_p3 = por %p481_p2, %p480_p1 }
   0x8   :  { %p483_p4 = pnand %p482_p3, %p476_p0 }
   0xa   :  { %486 = shalt.err (!%p483_p4)
}
   0xb   :  { %s512_s24 = smov 64   ;;  %s513_s25 = smov 4  }
   0xc   :  { %28 = dma.hbm_to_vmem [thread:$0]  %s601_s2, 1024, %s23_s22, [#allocation3], %s512_s24, %s512_s24, %s513_s25  }
   0xd   :  { %s514_s28 = smov [#allocation4]  }
   0xe   :  { %s36_s29 = sshll.u32 %s514_s28, 4  ;;  %s37_s29 = int_to_ptr.vmem [resolvable:$true] %s36_s29 }
   0xf   :  { %s495_s30 = scalar_lea.vmem %s37_s29, 1024  ;;  %p500_p6 = scmp.lt.s32.totalorder %s37_s29, %s37_s29 }
  0x10   :  { %p496_p5 = scmp.ne.s32.totalorder %s37_s29, %s495_s30  ;;  %p501_p7 = scmp.lt.s32.totalorder %s495_s30, %s495_s30 }
  0x12   :  { %p502_p8 = por %p501_p7, %p500_p6 }
  0x14   :  { %p503_p9 = pnand %p502_p8, %p496_p5 }
  0x16   :  { %506 = shalt.err (!%p503_p9)
}
  0x17   :  { %42 = dma.hbm_to_vmem [thread:$0]  %s603_s4, 1024, %s37_s29, [#allocation5], %s512_s24, %s512_s24, %s513_s25  }
  0x18   :  { %507 = dma.done.wait [#allocation3], 1024  }
  0x19   :  { %508 = vsyncadd [#allocation3], 4294966272 }
  0x1a   :  { %509 = dma.done.wait [#allocation5], 1024  }
  0x1b   :  { %510 = vsyncadd [#allocation5], 4294966272  ;;  %v515_v0 = vmov 0.0   ;;  %vm516_vm0 = vmmov 0   ;;  %vm64_vm1 = vcmask 1041408   ;;  %v442_v3 = vld [vmem:[%s599_s0] sm:$0xff]  }
  0x1c   :  { %390 = vmatprep.subr.bf16.mxu0 %v515_v0  ;;  %392 = vmatprep.mubr.msk.bf16.mxu0 %vm516_vm0, %v515_v0  ;;  %v54_v1 = vld [vmem:[%s600_s1] sm:$0x3]  ;;  %vm60_vm2 = vcmask 31744   ;;  %v443_v4 = vld [vmem:[#allocation2 + $0x38] sm:$0xff]   ;;  %v444_v5 = vld [vmem:[#allocation2 + $0x30] sm:$0xff]   ;;  %vm341_vm3 = vcmask 23552  }
  0x1d   :  { %396 = vmatprep.subr.bf16.mxu1 %v515_v0  ;;  %412 = vmatprep.mubr.msk.bf16.mxu1 %vm516_vm0, %v515_v0  ;;  %v66_v2 = vsel %vm64_vm1, %v54_v1, 0  ;;  %v445_v6 = vld [vmem:[#allocation2 + $0x28] sm:$0xff]   ;;  %v446_v7 = vld [vmem:[#allocation2 + $0x20] sm:$0xff]   ;;  %v447_v8 = vld [vmem:[#allocation2 + $0x18] sm:$0xff]  }
  0x1e   :  { %391 = vmatpush3.bf16.msra.mxu0 %v66_v2  ;;  %397 = vmatpush3.bf16.msra.mxu1 %v443_v4  ;;  %v448_v9 = vld [vmem:[#allocation2 + $0x10] sm:$0xff]   ;;  %v449_v10 = vld [vmem:[#allocation2 + $0x8] sm:$0xff]   ;;  %v450_v11 = vld [vmem:[#allocation2] sm:$0xff]  }
  0x1f   :  { %416 = vmatprep.subr.bf16.mxu0 %v515_v0  ;;  %398 = vmatprep.subr.bf16.mxu1 %v515_v0  ;;  %v451_v12 = vld [vmem:[#allocation4 + $0x38] sm:$0xff]   ;;  %v452_v13 = vld [vmem:[#allocation4 + $0x30] sm:$0xff]   ;;  %v453_v21 = vld [vmem:[#allocation4 + $0x28] sm:$0xff]  }
  0x20   :  { %v454_v22 = vld [vmem:[#allocation4 + $0x20] sm:$0xff]   ;;  %v455_v23 = vld [vmem:[#allocation4 + $0x18] sm:$0xff]   ;;  %v456_v24 = vld [vmem:[#allocation4 + $0x10] sm:$0xff]  }
  0x21   :  { %393 = vmatmul.mubr.msk.bf16.vlgmr.msra.gmra.mxu0 %vm60_vm2, %v442_v3  ;;  %v457_v25 = vld [vmem:[#allocation4 + $0x8] sm:$0xff]   ;;  %v458_v26 = vld [vmem:[#allocation4] sm:$0xff]  }
  0x22   :  { %432 = vmatprep.mubr.msk.bf16.mxu0 %vm516_vm0, %v515_v0  ;;  %399 = vmatpush3.bf16.msra.mxu1 %v444_v5  ;;  %v352_v27 = vld [vmem:[%s602_s3] ss:$0 sm:$0xff] }
  0x23   :  { %400 = vmatprep.subr.bf16.mxu1 %v515_v0  ;;  %417 = vmatpush3.bf16.msra.mxu0 %v451_v12  ;;  %v369_v37 = vld [vmem:[%s604_s5] ss:$0 sm:$0xff] }
  0x24   :  { %418 = vmatprep.subr.bf16.mxu0 %v515_v0 }
  0x26   :  { %401 = vmatpush3.bf16.msra.mxu1 %v445_v6 }
  0x27   :  { %402 = vmatprep.subr.bf16.mxu1 %v515_v0  ;;  %419 = vmatpush3.bf16.msra.mxu0 %v452_v13 }
  0x28   :  { %420 = vmatprep.subr.bf16.mxu0 %v515_v0 }
  0x2a   :  { %403 = vmatpush3.bf16.msra.mxu1 %v446_v7 }
  0x2b   :  { %404 = vmatprep.subr.bf16.mxu1 %v515_v0  ;;  %421 = vmatpush3.bf16.msra.mxu0 %v453_v21 }
  0x2c   :  { %422 = vmatprep.subr.bf16.mxu0 %v515_v0 }
  0x2e   :  { %405 = vmatpush3.bf16.msra.mxu1 %v447_v8 }
  0x2f   :  { %406 = vmatprep.subr.bf16.mxu1 %v515_v0  ;;  %423 = vmatpush3.bf16.msra.mxu0 %v454_v22 }
  0x30   :  { %424 = vmatprep.subr.bf16.mxu0 %v515_v0 }
  0x32   :  { %407 = vmatpush3.bf16.msra.mxu1 %v448_v9 }
  0x33   :  { %408 = vmatprep.subr.bf16.mxu1 %v515_v0  ;;  %425 = vmatpush3.bf16.msra.mxu0 %v455_v23 }
  0x34   :  { %426 = vmatprep.subr.bf16.mxu0 %v515_v0 }
  0x36   :  { %409 = vmatpush3.bf16.msra.mxu1 %v449_v10 }
  0x37   :  { %410 = vmatprep.subr.bf16.mxu1 %v515_v0  ;;  %427 = vmatpush3.bf16.msra.mxu0 %v456_v24 }
  0x38   :  { %428 = vmatprep.subr.bf16.mxu0 %v515_v0 }
  0x3a   :  { %411 = vmatpush3.bf16.msra.mxu1 %v450_v11 }
  0x3b   :  { %429 = vmatpush3.bf16.msra.mxu0 %v457_v25 }
  0x3c   :  { %430 = vmatprep.subr.bf16.mxu0 %v515_v0 }
  0x3f   :  { %431 = vmatpush3.bf16.msra.mxu0 %v458_v26 }
  0xe1   :  { %v102_v14 = vpop.f32.mrf.mxu0 }
  0xe2   :  { %459 = vtanh.f32 %v102_v14 }
  0xe3   :  { %v394_v15 = vpop.f32.mrf.mxu0 }
  0xe5   :  { %v105_v16 = vpop.f32.mrf.mxu0 }
  0xe6   :  { %461 = vtanh.f32 %v105_v16 }
  0xe7   :  { %v395_v17 = vpop.f32.mrf.mxu0 }
  0xef   :  { %v460_v18 = vpop.eup %459 }
  0xf3   :  { %v462_v19 = vpop.eup %461 }
  0xf4   :  { %v111_v20 = vpack.c.bf16 %v462_v19, %v460_v18 }
  0xf6   :  { %413 = vmatmul.mubr.bf16.vlgmr.msra.gmra.mxu1 %v111_v20 }
 0x1b6   :  { %v217_v28 = vpop.f32.mrf.mxu1 }
 0x1b7   :  { %v218_v29 = vadd.f32 %v352_v27, %v217_v28 }
 0x1b8   :  { %v414_v30 = vpop.f32.mrf.mxu1 }
 0x1b9   :  { %463 = vtanh.f32 %v218_v29 }
 0x1ba   :  { %v220_v31 = vpop.f32.mrf.mxu1 }
 0x1bb   :  { %v221_v32 = vadd.f32 %v352_v27, %v220_v31 }
 0x1bc   :  { %v415_v33 = vpop.f32.mrf.mxu1 }
 0x1bd   :  { %465 = vtanh.f32 %v221_v32 }
 0x1c6   :  { %v464_v34 = vpop.eup %463 }
 0x1ca   :  { %v466_v35 = vpop.eup %465 }
 0x1cb   :  { %v226_v36 = vpack.c.bf16 %v466_v35, %v464_v34 }
 0x1cd   :  { %433 = vmatmul.mubr.bf16.vlgmr.msra.gmra.mxu0 %v226_v36 }
 0x28d   :  { %v325_v38 = vpop.f32.mrf.mxu0 }
 0x28e   :  { %v339_v39 = vadd.f32 %v369_v37, %v325_v38 }
 0x28f   :  { %v434_v40 = vpop.f32.mrf.mxu0 }
 0x290   :  { %342 = vst.msk [vmem:[%s605_s6] sm:$0xff] %vm341_vm3, %v339_v39 }
 0x291   :  { %v328_v41 = vpop.f32.mrf.mxu0 }
 0x292   :  { %v340_v42 = vadd.f32 %v369_v37, %v328_v41 }
 0x293   :  { %v435_v43 = vpop.f32.mrf.mxu0 }
 0x294   :  { %343 = vst.msk [vmem:[%s605_s6 + $0x8] sm:$0xff] %vm341_vm3, %v340_v42 }
 0x295   :  { %348 = vsyncpa [#allocation3], 1 }
 0x296   :  { %349 = vsyncpa [#allocation5], 1 }

</bundles_post_ra>
